<compile_context>
chip_gen: v7x
topology: tpu7x:2x2x1
jax: 0.10.0
libtpu: 0.0.40
codegen_flags: <defaults>
</compile_context>

<pallas_src>
import jax
import jax.numpy as jnp
from jax.experimental import pallas as pl
from jax.experimental.pallas import tpu as pltpu


def _conv_block_1_kernel(x_ref, w1_ref, c1_ref, w2_ref, c2_ref, o_ref):
    # x_ref : (1, Cin, T)   input pixel columns (compute dtype, e.g. bf16)
    # w1_ref: (Cout, Cin)   BN-folded conv1 weight (compute dtype)
    # c1_ref: (Cout, 1)     BN-folded conv1 bias (f32)
    # w2_ref: (Cout, Cout)  BN-folded conv2 weight (f32, kept full precision)
    # c2_ref: (Cout, 1)     BN-folded conv2 bias (f32)
    # o_ref : (1, Cout, T)  output pixel columns (out dtype, bf16 by default)
    x = x_ref[0]                                                      # (Cin, T)

    h = jnp.dot(w1_ref[...], x, preferred_element_type=jnp.float32)   # (Cout, T)
    h = jnp.maximum(h + c1_ref[...], 0.0)                             # f32

    y = jnp.dot(w2_ref[...], h, preferred_element_type=jnp.float32)   # (Cout, T)
    o_ref[0] = jnp.maximum(y + c2_ref[...], 0.0).astype(o_ref.dtype)


def conv_block_1_pallas(x_nchw, params, *, compute_dtype=jnp.bfloat16,
                        out_dtype=None, max_tile_hw=32768, eps=1e-5):
    """Fused [1x1 conv -> BN(inference) -> ReLU] x 2.

    x_nchw: (N, Cin, H, W)
    params: dict with w1 (Cout,Cin), b1, gamma1, beta1, mean1, var1,
            w2 (Cout,Cout), b2, gamma2, beta2, mean2, var2
    returns (N, Cout, H, W) in `out_dtype` (defaults to `compute_dtype`, bf16,
    to halve the dominant HBM writeback; pass out_dtype=jnp.float32 for f32).
    """
    N, Cin, H, W = x_nchw.shape
    Cout = params["w1"].shape[0]
    HW = H * W
    f32 = jnp.float32
    if out_dtype is None:
        out_dtype = compute_dtype

    # --- Fold BatchNorm (running stats) into conv weights/biases, in f32. ---
    s1 = params["gamma1"].astype(f32) / jnp.sqrt(params["var1"].astype(f32) + eps)
    t1 = params["beta1"].astype(f32) - params["mean1"].astype(f32) * s1
    s2 = params["gamma2"].astype(f32) / jnp.sqrt(params["var2"].astype(f32) + eps)
    t2 = params["beta2"].astype(f32) - params["mean2"].astype(f32) * s2

    w1f = (params["w1"].astype(f32) * s1[:, None]).astype(compute_dtype)  # (Cout, Cin)
    c1 = (params["b1"].astype(f32) * s1 + t1).reshape(Cout, 1)            # (Cout, 1) f32
    w2f = params["w2"].astype(f32) * s2[:, None]                          # (Cout, Cout) f32
    c2 = (params["b2"].astype(f32) * s2 + t2).reshape(Cout, 1)            # (Cout, 1) f32

    # --- Channel-major view: (N, Cin, H*W).  Pure reshape, no transpose. ---
    x = x_nchw.reshape(N, Cin, HW).astype(compute_dtype)

    in_b = jnp.dtype(compute_dtype).itemsize
    out_b = jnp.dtype(out_dtype).itemsize

    # --- Generation-dependent VMEM budget: half of physical, clamped to
    #     [32 MiB, 96 MiB] (v5e/v6e: 128 MiB physical -> 64 MiB; v7x: 64 MiB
    #     physical -> 32 MiB). ---
    try:
        vmem_cap = int(pltpu.get_tpu_info().vmem_capacity_bytes)
    except Exception:  # pragma: no cover - conservative fallback
        vmem_cap = 64 << 20
    vmem_limit = max(32 << 20, min(vmem_cap // 2, 96 << 20))
    tile_budget = (vmem_limit * 3) // 4  # leave headroom for weights/compiler scratch

    # --- Per-spatial-column VMEM: double-buffered x & out tiles + f32
    #     intermediates (h, y) with margin. ---
    bytes_per_col = 2 * Cin * in_b + 2 * Cout * out_b + Cout * 12
    cap = max(128, min(max_tile_hw, (tile_budget // bytes_per_col) // 128 * 128))
    # NOTE: constant-index weight/bias operands still get default double
    # buffering; at these channel counts that is a few KiB, so pl.Buffered(1)
    # is intentionally not used (no measurable VMEM pressure to recover).

    if HW <= cap:
        # Single full-extent spatial block (layout-legal for any HW).
        tile_hw = HW
        # v7x has 2 TensorCores: make sure there are >= 2 parallel programs.
        if N == 1 and HW >= 256 and HW % 256 == 0:
            tile_hw = HW // 2
    else:
        # Lane-aligned tile; ragged last tile (HW % tile_hw != 0) is handled by
        # Pallas block masking: OOB reads are ignored garbage on independent
        # columns, OOB writes are dropped.  No wrapper jnp.pad / slice copies.
        tile_hw = cap

    grid = (N, pl.cdiv(HW, tile_hw))

    out = pl.pallas_call(
        _conv_block_1_kernel,
        out_shape=jax.ShapeDtypeStruct((N, Cout, HW), out_dtype),
        grid_spec=pltpu.PrefetchScalarGridSpec(
            num_scalar_prefetch=0,
            grid=grid,
            in_specs=[
                pl.BlockSpec((1, Cin, tile_hw), lambda n, j: (n, 0, j)),  # x tile
                pl.BlockSpec((Cout, Cin), lambda n, j: (0, 0)),           # w1 folded
                pl.BlockSpec((Cout, 1), lambda n, j: (0, 0)),             # c1 folded
                pl.BlockSpec((Cout, Cout), lambda n, j: (0, 0)),          # w2 folded
                pl.BlockSpec((Cout, 1), lambda n, j: (0, 0)),             # c2 folded
            ],
            out_specs=pl.BlockSpec((1, Cout, tile_hw), lambda n, j: (n, 0, j)),
        ),
        compiler_params=pltpu.CompilerParams(
            dimension_semantics=("parallel", "parallel"),
            vmem_limit_bytes=vmem_limit,
        ),
    )(x, w1f, c1, w2f, c2)

    return out.reshape(N, Cout, H, W)


def _reference(x_nchw, params):
    """Pure-JAX f32 reference of the same (inference-BN) forward pass."""
    eps = 1e-5
    x = jnp.transpose(x_nchw, (0, 2, 3, 1))  # NHWC
    h = jnp.einsum("nhwc,oc->nhwo", x, params["w1"]) + params["b1"]
    h = (h - params["mean1"]) / jnp.sqrt(params["var1"] + eps) * params["gamma1"] + params["beta1"]
    h = jnp.maximum(h, 0.0)
    y = jnp.einsum("nhwc,oc->nhwo", h, params["w2"]) + params["b2"]
    y = (y - params["mean2"]) / jnp.sqrt(params["var2"] + eps) * params["gamma2"] + params["beta2"]
    y = jnp.maximum(y, 0.0)
    return jnp.transpose(y, (0, 3, 1, 2))


def _make_params(key, ch_in, ch_out):
    ks = jax.random.split(key, 6)
    return {
        "w1": jax.random.normal(ks[0], (ch_out, ch_in), jnp.float32) * 0.3,
        "b1": jax.random.normal(ks[1], (ch_out,), jnp.float32) * 0.1,
        "gamma1": 1.0 + 0.1 * jax.random.normal(ks[2], (ch_out,), jnp.float32),
        "beta1": 0.05 * jnp.arange(ch_out, dtype=jnp.float32),
        "mean1": 0.02 * jnp.arange(ch_out, dtype=jnp.float32),
        "var1": 1.0 + 0.01 * jnp.arange(ch_out, dtype=jnp.float32),
        "w2": jax.random.normal(ks[3], (ch_out, ch_out), jnp.float32) * 0.3,
        "b2": jax.random.normal(ks[4], (ch_out,), jnp.float32) * 0.1,
        "gamma2": 1.0 + 0.1 * jax.random.normal(ks[5], (ch_out,), jnp.float32),
        "beta2": -0.03 * jnp.arange(ch_out, dtype=jnp.float32),
        "mean2": 0.01 * jnp.arange(ch_out, dtype=jnp.float32),
        "var2": 1.0 + 0.02 * jnp.arange(ch_out, dtype=jnp.float32),
    }


if __name__ == "__main__":
    key = jax.random.PRNGKey(0)
    kx, kp = jax.random.split(key)

    N, ch_in, ch_out, H, W = 2, 4, 8, 16, 16
    x = jax.random.normal(kx, (N, ch_in, H, W), jnp.float32)
    params = _make_params(kp, ch_in, ch_out)

    out = jax.block_until_ready(conv_block_1_pallas(x, params))
    ref = _reference(x, params)

    assert out.shape == (N, ch_out, H, W)
    # bf16 input/weight streaming + bf16 output (f32 accumulation, f32 BN fold,
    # f32 second matmul) -> relaxed tolerance against the pure-f32 reference.
    out_f32 = out.astype(jnp.float32)
    assert jnp.allclose(out_f32, ref, atol=1.5e-1, rtol=5e-2), float(
        jnp.max(jnp.abs(out_f32 - ref)))

    print("KERNEL_OK")
</pallas_src>

<mosaic_0001>
module attributes {stable_mosaic.version = 11 : i64} {
  func.func @_conv_block_1_kernel(%arg0: i32, %arg1: i32, %arg2: memref<1x4x256xbf16, #tpu.memory_space<vmem>>, %arg3: memref<8x4xbf16, #tpu.memory_space<vmem>>, %arg4: memref<8x1xf32, #tpu.memory_space<vmem>>, %arg5: memref<8x8xf32, #tpu.memory_space<vmem>>, %arg6: memref<8x1xf32, #tpu.memory_space<vmem>>, %arg7: memref<1x8x256xbf16, #tpu.memory_space<vmem>>) attributes {dimension_semantics = [#tpu.dimension_semantics<parallel>, #tpu.dimension_semantics<parallel>], iteration_bounds = array<i64: 2, 1>, scalar_prefetch = 0 : i64, scratch_operands = 0 : i64, tpu.core_type = #tpu.core_type<tc>, window_params = [{transform_indices = @transform_0, window_bounds = array<i64: 1, 4, 256>}, {pipeline_mode = #tpu.pipeline_mode<synchronous>, transform_indices = @transform_1, window_bounds = array<i64: 8, 4>}, {pipeline_mode = #tpu.pipeline_mode<synchronous>, transform_indices = @transform_2, window_bounds = array<i64: 8, 1>}, {pipeline_mode = #tpu.pipeline_mode<synchronous>, transform_indices = @transform_3, window_bounds = array<i64: 8, 8>}, {pipeline_mode = #tpu.pipeline_mode<synchronous>, transform_indices = @transform_4, window_bounds = array<i64: 8, 1>}, {transform_indices = @transform_5, window_bounds = array<i64: 1, 8, 256>}]} {
    %c0 = arith.constant 0 : index
    %c0_0 = arith.constant 0 : index
    %c0_1 = arith.constant 0 : index
    %0 = vector.load %arg2[%c0, %c0_0, %c0_1] : memref<1x4x256xbf16, #tpu.memory_space<vmem>>, vector<1x4x256xbf16>
    %1 = vector.shape_cast %0 : vector<1x4x256xbf16> to vector<4x256xbf16>
    %c0_2 = arith.constant 0 : index
    %c0_3 = arith.constant 0 : index
    %2 = vector.load %arg3[%c0_2, %c0_3] : memref<8x4xbf16, #tpu.memory_space<vmem>>, vector<8x4xbf16>
    %cst = arith.constant dense<0.000000e+00> : vector<8x256xf32>
    %3 = tpu.matmul %2, %1, %cst {dimension_numbers = #tpu.dot_dimension_numbers<[1], [0], [0], [1], [0, 0, 1, 1], [], []>} : vector<8x4xbf16>, vector<4x256xbf16>, vector<8x256xf32> -> vector<8x256xf32>
    %c0_4 = arith.constant 0 : index
    %c0_5 = arith.constant 0 : index
    %4 = vector.load %arg4[%c0_4, %c0_5] : memref<8x1xf32, #tpu.memory_space<vmem>>, vector<8x1xf32>
    %5 = vector.broadcast %4 : vector<8x1xf32> to vector<8x256xf32>
    %6 = arith.addf %3, %5 : vector<8x256xf32>
    %cst_6 = arith.constant 0.000000e+00 : f32
    %7 = vector.broadcast %cst_6 : f32 to vector<8x256xf32>
    %8 = arith.maximumf %6, %7 : vector<8x256xf32>
    %c0_7 = arith.constant 0 : index
    %c0_8 = arith.constant 0 : index
    %9 = vector.load %arg5[%c0_7, %c0_8] : memref<8x8xf32, #tpu.memory_space<vmem>>, vector<8x8xf32>
    %cst_9 = arith.constant dense<0.000000e+00> : vector<8x256xf32>
    %10 = tpu.matmul %9, %8, %cst_9 {dimension_numbers = #tpu.dot_dimension_numbers<[1], [0], [0], [1], [0, 0, 1, 1], [], []>} : vector<8x8xf32>, vector<8x256xf32>, vector<8x256xf32> -> vector<8x256xf32>
    %c0_10 = arith.constant 0 : index
    %c0_11 = arith.constant 0 : index
    %11 = vector.load %arg6[%c0_10, %c0_11] : memref<8x1xf32, #tpu.memory_space<vmem>>, vector<8x1xf32>
    %12 = vector.broadcast %11 : vector<8x1xf32> to vector<8x256xf32>
    %13 = arith.addf %10, %12 : vector<8x256xf32>
    %cst_12 = arith.constant 0.000000e+00 : f32
    %14 = vector.broadcast %cst_12 : f32 to vector<8x256xf32>
    %15 = arith.maximumf %13, %14 : vector<8x256xf32>
    %16 = arith.truncf %15 : vector<8x256xf32> to vector<8x256xbf16>
    %c0_13 = arith.constant 0 : index
    %c0_14 = arith.constant 0 : index
    %c0_15 = arith.constant 0 : index
    %17 = vector.load %arg7[%c0_13, %c0_14, %c0_15] : memref<1x8x256xbf16, #tpu.memory_space<vmem>>, vector<1x8x256xbf16>
    %18 = vector.shape_cast %17 : vector<1x8x256xbf16> to vector<8x256xbf16>
    %19 = vector.shape_cast %16 : vector<8x256xbf16> to vector<1x8x256xbf16>
    tpu.vector_store %arg7[%c0_13, %c0_14, %c0_15], %19 {strides = array<i32>} : memref<1x8x256xbf16, #tpu.memory_space<vmem>>, vector<1x8x256xbf16>,
    return
  }
  func.func @transform_0(%arg0: i32, %arg1: i32) -> (i32, i32, i32) {
    %c0_i32 = arith.constant 0 : i32
    %c0_i32_0 = arith.constant 0 : i32
    return %arg0, %c0_i32, %arg1 : i32, i32, i32
  }
  func.func @transform_1(%arg0: i32, %arg1: i32) -> (i32, i32) {
    %c0_i32 = arith.constant 0 : i32
    %c0_i32_0 = arith.constant 0 : i32
    %c0_i32_1 = arith.constant 0 : i32
    return %c0_i32, %c0_i32_0 : i32, i32
  }
  func.func @transform_2(%arg0: i32, %arg1: i32) -> (i32, i32) {
    %c0_i32 = arith.constant 0 : i32
    %c0_i32_0 = arith.constant 0 : i32
    %c0_i32_1 = arith.constant 0 : i32
    return %c0_i32, %c0_i32_0 : i32, i32
  }
  func.func @transform_3(%arg0: i32, %arg1: i32) -> (i32, i32) {
    %c0_i32 = arith.constant 0 : i32
    %c0_i32_0 = arith.constant 0 : i32
    %c0_i32_1 = arith.constant 0 : i32
    return %c0_i32, %c0_i32_0 : i32, i32
  }
  func.func @transform_4(%arg0: i32, %arg1: i32) -> (i32, i32) {
    %c0_i32 = arith.constant 0 : i32
    %c0_i32_0 = arith.constant 0 : i32
    %c0_i32_1 = arith.constant 0 : i32
    return %c0_i32, %c0_i32_0 : i32, i32
  }
  func.func @transform_5(%arg0: i32, %arg1: i32) -> (i32, i32, i32) {
    %c0_i32 = arith.constant 0 : i32
    %c0_i32_0 = arith.constant 0 : i32
    return %arg0, %c0_i32, %arg1 : i32, i32, i32
  }
}

</mosaic_0001>

<bundles_post_ra>
// kernel: tpu_custom_call.1
= control target key start
LH: loop header
LB: loop body
LE: loop exit
PB: predicated region body
PF: predicated region fallthrough
CT: control target
= control target key end

     0   :  { %10 = vsyncpa [#allocation3], 0  ;;  %s828_s0 = inlined_call_operand.vmem [shape: bf16[2,4,256], index: 0, kind: input, shape index: {}]   ;;  %s829_s1 = inlined_call_operand.vmem [shape: bf16[8,4], index: 1, kind: input, shape index: {}]   ;;  %s830_s2 = inlined_call_operand.vmem [shape: f32[8,1], index: 2, kind: input, shape index: {}]   ;;  %s831_s3 = inlined_call_operand.vmem [shape: f32[8,8], index: 3, kind: input, shape index: {}]   ;;  %s832_s4 = inlined_call_operand.vmem [shape: f32[8,1], index: 4, kind: input, shape index: {}]   ;;  %s833_s5 = inlined_call_operand.hbm [shape: bf16[2,8,256], index: 5, kind: output, shape index: {}]  }
   0x1   :  { %12 = vsyncpa [#allocation3 + $0x1], 0  ;;  %s704_s18 = smov 0   ;;  %s706_s19 = smov 0  }
   0x2   :  { %s708_s20 = smov 0   ;;  %s710_s21 = smov 0  }
   0x3   :  { %s712_s22 = smov 0   ;;  %s714_s23 = smov 0  }
   0x4 LB: > { %s512_s24 = sadd.s32 4294967295, %s669_s23   ;;  %s513_s25 = sadd.s32 4294967294, %s669_s23   ;;  %s669_s23 = sphi %s714_s23, %s18_s23   ;;  %s665_s22 = sphi %s712_s22, %s840_s22   ;;  %s661_s21 = sphi %s710_s21, %s839_s21   ;;  %s657_s20 = sphi %s708_s20, %s838_s20   ;;  %s653_s19 = sphi %s706_s19, %s837_s19   ;;  %s649_s18 = sphi %s704_s18, %s836_s18  }
   0x5   : > { %s30_s26 = sadd.s32 1, %s665_s22  ;;  %s151_s27 = sadd.s32 1, %s657_s20 }
   0x6   : > { %p32_p0 = scmp.ge.s32.totalorder %s30_s26, 2  ;;  %p161_p1 = scmp.ne.s32.totalorder %s657_s20, %s653_s19 }
   0x7   : > { %p162_p2 = scmp.eq.s32.totalorder %s512_s24, 1  ;;  %p167_p3 = scmp.ne.s32.totalorder %s653_s19, %s649_s18 }
   0x8   : > { %s842_s26 = smov (%p32_p0, %s30_s26), 0  ;;  %p168_p5 = scmp.eq.s32.totalorder %s513_s25, 1 }
   0x9   : > { %p744_p4 = por %p162_p2, %p161_p1  ;;  %s146_s29 = ssub.s32 %s665_s22, %s842_s26 }
   0xa   : > { %p516_p6 = scmp.ge.s32.totalorder %s669_s23, 1  ;;  %p149_p7 = scmp.eq.s32.totalorder %s146_s29, 0 }
   0xb   : > { %p751_p8 = por %p168_p5, %p167_p3  ;;  %p211_p9 = scmp.lt.s32.totalorder %s669_s23, 3 }
   0xc   : > { %s757_s6 = scalar_select %p149_p7, %s657_s20, %s151_s27  }
   0xd   : > { %p212_p10 = pnand %p516_p6, %p211_p9 }
   0xe   : > { %p244_p11 = scmp.lt.s32.totalorder (!%p212_p10), %s661_s21, 1  ;;  %v671_v0 = vmov (!%p212_p10), 0   ;;  %v257_v1 = vld [vmem:[%s830_s2] sm:$0xff] (!%p212_p10)  ;;  %vm276_vm0 = vcmask (!%p212_p10), 1041408   ;;  %vm272_vm1 = vcmask (!%p212_p10), 31744   ;;  %v672_v7 = vmov (!%p212_p10), 0.0  }
   0xf   : > { %215 = sbr.rel (%p212_p10) target bundleno = 485 (0x1e5), region = 40  ;;  %315 = vmatprep.mubr.bf16.mxu0 (!%p212_p10), %v671_v0  ;;  %590 = vset.pattern.permute.xlu0 (!%p212_p10), %v671_v0  ;;  %v327_v2 = vld [vmem:[%s832_s4] sm:$0xff] (!%p212_p10)  ;;  %vm333_vm2 = vcmask (!%p212_p10), 64512   ;;  %s240_s27 = sand.u32 (!%p212_p10), 1, %s653_s19  }
  0x10   : > { %260 = vperm.xlu0 (!%p212_p10), %590, %v257_v1   ;;  %v256_v6 = vld [vmem:[%s829_s1] sm:$0xf] (!%p212_p10)  ;;  %401 = vmatprep.mubr.f32.mxu1 (!%p212_p10), %v672_v7  ;;  %s517_s29 = sshll.u32 (!%p212_p10), %s240_s27, 3  ;;  %s532_s7 = sshll.u32 (!%p212_p10), %s661_s21, 7 }
  0x11   : > { %v326_v17 = vld [vmem:[%s831_s3] sm:$0xff] (!%p212_p10)  ;;  %s242_s8 = scalar_lea.vmem (!%p212_p10), [#allocation2], %s517_s29  ;;  %s420_s13 = scalar_lea.sflag (!%p212_p10), [#allocation3], %s240_s27 }
  0x14   : > { %330 = vperm.xlu0 (!%p212_p10), %590, %v327_v2  }
  0x16   : > { %s245_s9 = scalar_select %p244_p11, %s661_s21, 1 }
  0x17   : > { %s673_s21 = smov [#allocation2]  }
  0x18   : > { %s530_s12 = sshll.u32 %s245_s9, 2  ;;  %s436_s9 = sshll.u32 %s242_s8, 4  ;;  %s783_s9 = int_to_ptr.vmem [resolvable:$true] %s436_s9 }
  0x19   : > { %s251_s15 = scalar_lea.vmem %s828_s0, %s530_s12  ;;  %s781_s12 = scalar_lea.hbm %s833_s5, %s532_s7 }
  0x1a   : > { %v520_v3 = vld.sshfl [vmem:[%s251_s15] sm:$0x33 pattern:$0x76325410]  ;;  %s591_s14 = scalar_lea.vmem %s783_s9, 128  ;;  %s595_s15 = sshll.u32 %s673_s21, 4  ;;  %s596_s15 = int_to_ptr.vmem [resolvable:$false] %s595_s15 }
  0x1b   : > { %v271_v4 = vcombine.high %v520_v3, %v520_v3  ;;  %v278_v5 = vsel %vm276_vm0, %v520_v3, 0  ;;  %p592_p12 = scmp.ne.s32.totalorder %s783_s9, %s591_s14  ;;  %s597_s16 = scalar_lea.vmem %s596_s15, 256 }
  0x1c   : > { %p598_p1 = scmp.lt.s32.totalorder %s783_s9, %s596_s15  ;;  %p599_p2 = scmp.lt.s32.totalorder %s597_s16, %s591_s14 }
  0x1d   : > { %521 = vmatprep.subr.msk.bf16.mxu0 %vm276_vm0, %v271_v4  ;;  %p593_p13 = pnand %p592_p12, %p744_p4 }
  0x1e   : > { %284 = vmatpush1.bf16.msra.mxu0 %v278_v5  ;;  %p600_p3 = por %p599_p2, %p598_p1 }
  0x1f   : > { %p594_p0 = pneg %p593_p13 }
  0x21   : > { %522 = vmatmul.mubr.msk.bf16.vlgmr.msra.gmra.mrb[0].mxu0 %vm272_vm1, %v256_v6  ;;  %p601_p5 = pnand %p600_p3, %p594_p0 }
  0x8f   : > { %v261_v8 = vpop.permute.xlu0 %260 }
  0x93   : > { %v331_v18 = vpop.permute.xlu0 %330 }
  0xf4   : > { %v317_v9 = vpop.f32.mrb[0].mxu0 }
  0xf5   : > { %v318_v10 = vadd.f32 %v317_v9, %v261_v8  ;;  %v319_v11 = vpop.f32.mrb[1].mxu0 }
  0xf6   : > { %v321_v12 = vpop.f32.mrb[2].mxu0  ;;  %v320_v13 = vadd.f32 %v319_v11, %v261_v8 }
  0xf7   : > { %v322_v14 = vpop.f32.mrb[3].mxu0  ;;  %v324_v16 = vmax.f32 %v318_v10, 0.0 }
  0xf8   : > { %v325_v15 = vmax.f32 %v320_v13, 0.0 }
  0xfa   : > { %337 = vmatprep.subr.mxu1 %v325_v15 }
  0xfb   : > { %338 = vmatpush1.msra.mxu1 %v324_v16 }
  0xfc   : > { %523 = vmatmul.mubr.msk.f32.vlgmr.msra.gmra.mrb[0].mxu1 %vm333_vm2, %v326_v17 }
 0x1cf   : > { %v403_v19 = vpop.f32.mrb[0].mxu1 }
 0x1d0   : > { %v404_v20 = vadd.f32 %v403_v19, %v331_v18  ;;  %v405_v21 = vpop.f32.mrb[1].mxu1 }
 0x1d1   : > { %v406_v22 = vadd.f32 %v405_v21, %v331_v18 }
 0x1d2   : > { %v408_v23 = vmax.f32 %v404_v20, 0.0 }
 0x1d3   : > { %v409_v24 = vmax.f32 %v406_v22, 0.0 }
 0x1d5   : > { %v531_v25 = vpack.c.bf16 %v409_v24, %v408_v23 }
 0x1d7   : > { %418 = vst [vmem:[%s242_s8] sm:$0xff] %v531_v25 }
 0x1d8   : > { %604 = shalt.err (!%p601_p5)
}
 0x1d9   : > { %s605_s17 = scalar_lea.hbm %s781_s12, 128  ;;  %s609_s27 = scalar_lea.hbm %s833_s5, 256 }
 0x1da   : > { %p606_p6 = scmp.ne.s32.totalorder %s781_s12, %s605_s17  ;;  %p610_p10 = scmp.lt.u32.totalorder %s781_s12, %s833_s5 }
 0x1db   : > { %p611_p11 = scmp.lt.u32.totalorder %s609_s27, %s605_s17  ;;  %p613_p13 = scmp.lt.u32.totalorder %s605_s17, %s781_s12 }
 0x1dc   : > { %p607_p7 = pnand %p606_p6, %p744_p4 }
 0x1dd   : > { %p612_p12 = por %p611_p11, %p610_p10 }
 0x1de   : > { %p608_p9 = pneg %p607_p7 }
 0x1df   : > { %p614_p0 = por %p613_p13, %p612_p12 }
 0x1e1   : > { %p615_p1 = pnand %p614_p0, %p608_p9 }
 0x1e3   : > { %618 = shalt.err (!%p615_p1)
}
 0x1e4   : > { %533 = dma.vmem_to_hbm [thread:$0]  (%p744_p4), %s783_s9, 128, %s781_s12, %s420_s13  }
 0x1e5 PF: > { %p539_p2 = scmp.ge.s32.totalorder %s669_s23, 2  ;;  %s448_s8 = sand.u32 1, %s649_s18  }
 0x1e6   : > { %s449_s10 = scalar_lea.sflag [#allocation3], %s448_s8 }
 0x1e7   : > { %p536_p3 = pnand %p539_p2, %p751_p8 }
 0x1e9   : > { %644 = dma.done.wait (!%p536_p3), %s449_s10, 128  }
 0x1ea   : > { %646 = vsyncadd (!%p536_p3), %s449_s10, 4294967168  ;;  %s18_s23 = sadd.s32 1, %s669_s23   ;;  %s836_s18 = smov %s653_s19 }
 0x1eb   : > { %p15_p5 = scmp.ge.s32.totalorder %s18_s23, 4   ;;  %s837_s19 = smov %s657_s20 }
 0x1ec   : > { %s838_s20 = smov %s757_s6  ;;  %s839_s21 = smov %s665_s22 }
 0x1ed   : > { %s840_s22 = smov %s842_s26  ;;  %17 = sbr.rel (!%p15_p5) target bundleno = 4 (0x4), region = 75 }
 0x1f4   :  { %454 = vsyncpa [#allocation3], 1 }
 0x1f5   :  { %456 = vsyncpa [#allocation3 + $0x1], 1 }

</bundles_post_ra>
